<compile_context>
chip_gen: v7x
topology: tpu7x:2x2x1
jax: 0.10.0
libtpu: 0.0.40
codegen_flags: <defaults>
</compile_context>

<pallas_src>
import functools

import jax
import jax.numpy as jnp
from jax.experimental import pallas as pl
from jax.experimental.pallas import tpu as pltpu


# ----------------------------------------------------------------------------
# Fused kernel
# ----------------------------------------------------------------------------
def _fused_kd_kernel(*refs, cfg):
    """One grid step == one mapped layer.  Accumulates into SMEM scalar.

    refs (in order):
      t_attn, s_attn            (B, C)        -- layer l slice (squeezed)
      t_hddn, s_hddn            (B, Dt)/(B, Ds)
      hddn_w, hddn_b            (Ds, Dt)/(1, Dt)
      t_embd, s_embd            (W, Dte)/(W, Dse)   -- resident
      embd_w, embd_b            (Dse, Dte)/(1, Dte) -- resident
      [t_logits, s_logits]      (B, V)              -- resident, optional
      out_ref                   (1, 1) SMEM scalar accumulator
    """
    if cfg["include_prediction"]:
        (t_attn, s_attn, t_hddn, s_hddn, w_ref, b_ref,
         t_embd, s_embd, ew_ref, eb_ref, t_log, s_log, out_ref) = refs
    else:
        (t_attn, s_attn, t_hddn, s_hddn, w_ref, b_ref,
         t_embd, s_embd, ew_ref, eb_ref, out_ref) = refs
        t_log = s_log = None

    l = pl.program_id(0)

    # ---- one-time terms: embedding projected MSE (+ soft CE), at l == 0 ----
    @pl.when(l == 0)
    def _init():
        # Embedding: sum((s_embd @ W + b - t_embd)^2) / count
        proj = jnp.dot(s_embd[...], ew_ref[...],
                       preferred_element_type=jnp.float32)
        proj = proj + eb_ref[...]
        de = proj - t_embd[...].astype(jnp.float32)
        total = jnp.sum(de * de) * cfg["inv_embd_count"]

        if cfg["include_prediction"]:
            t = t_log[...].astype(jnp.float32) * cfg["inv_temp"]
            s = s_log[...].astype(jnp.float32) * cfg["inv_temp"]
            t_shift = t - jnp.max(t, axis=-1, keepdims=True)
            t_exp = jnp.exp(t_shift)
            t_sum = jnp.sum(t_exp, axis=-1, keepdims=True)          # (B, 1)
            s_shift = s - jnp.max(s, axis=-1, keepdims=True)
            log_z = jnp.log(jnp.sum(jnp.exp(s_shift), axis=-1,
                                    keepdims=True))                 # (B, 1)
            # -(softmax(t) * log_softmax(s)).sum(-1) == log_z - sum(p*s_shift)
            # normalization folded into one division per row.
            ce = log_z - (jnp.sum(t_exp * s_shift, axis=-1,
                                  keepdims=True) / t_sum)           # (B, 1)
            total = total + jnp.sum(ce) * cfg["inv_batch"]

        out_ref[0, 0] = total

    # ---- per-layer terms -----------------------------------------------
    # Attention MSE (no projection); cast in-kernel, accumulate in f32.
    da = s_attn[...].astype(jnp.float32) - t_attn[...].astype(jnp.float32)
    layer = jnp.sum(da * da) * cfg["inv_attn_count"]

    # Hidden projected MSE; MXU sees native-dtype operands, f32 accumulation.
    proj = jnp.dot(s_hddn[...], w_ref[...],
                   preferred_element_type=jnp.float32)
    proj = proj + b_ref[...]
    dh = proj - t_hddn[...].astype(jnp.float32)
    layer = layer + jnp.sum(dh * dh) * cfg["inv_hddn_count"]

    out_ref[0, 0] += layer


# ----------------------------------------------------------------------------
# Wrapper: single fused pallas_call over the layer grid
# ----------------------------------------------------------------------------
def fused_kd_loss(t_attn, s_attn, t_hddn, s_hddn, hddn_w, hddn_b,
                  t_embd, s_embd, embd_w, embd_b,
                  t_logits=None, s_logits=None, temperature=1.0):
    include_prediction = t_logits is not None

    L, Ba, Ca = t_attn.shape
    _, Bh, Dth = t_hddn.shape
    _, _, Dsh = s_hddn.shape
    We, Dte = t_embd.shape
    _, Dse = s_embd.shape
    assert L >= 1, "layer_mapping must contain at least one layer"

    cfg = dict(
        include_prediction=include_prediction,
        inv_attn_count=1.0 / float(Ba * Ca),
        inv_hddn_count=1.0 / float(Bh * Dth),
        inv_embd_count=1.0 / float(We * Dte),
        inv_temp=1.0 / float(temperature),
        inv_batch=(1.0 / float(t_logits.shape[0])) if include_prediction else 0.0,
    )

    in_specs = [
        pl.BlockSpec((None, Ba, Ca),  lambda l: (l, 0, 0)),   # t_attn
        pl.BlockSpec((None, Ba, Ca),  lambda l: (l, 0, 0)),   # s_attn
        pl.BlockSpec((None, Bh, Dth), lambda l: (l, 0, 0)),   # t_hddn
        pl.BlockSpec((None, Bh, Dsh), lambda l: (l, 0, 0)),   # s_hddn
        pl.BlockSpec((None, Dsh, Dth), lambda l: (l, 0, 0)),  # hddn_w
        pl.BlockSpec((None, 1, Dth),  lambda l: (l, 0, 0)),   # hddn_b
        pl.BlockSpec((We, Dte),       lambda l: (0, 0)),      # t_embd (resident)
        pl.BlockSpec((We, Dse),       lambda l: (0, 0)),      # s_embd (resident)
        pl.BlockSpec((Dse, Dte),      lambda l: (0, 0)),      # embd_w (resident)
        pl.BlockSpec((1, Dte),        lambda l: (0, 0)),      # embd_b (resident)
    ]
    args = [t_attn, s_attn, t_hddn, s_hddn, hddn_w, hddn_b,
            t_embd, s_embd, embd_w, embd_b]

    flops = 2 * We * Dse * Dte + 2 * L * Bh * Dsh * Dth
    transcendentals = 0
    if include_prediction:
        Bl, V = t_logits.shape
        in_specs += [pl.BlockSpec((Bl, V), lambda l: (0, 0)),  # t_logits
                     pl.BlockSpec((Bl, V), lambda l: (0, 0))]  # s_logits
        args += [t_logits, s_logits]
        transcendentals = 2 * Bl * V + Bl            # exps + logs
    bytes_accessed = int(sum(a.size * a.dtype.itemsize for a in args)) + 4

    kernel = functools.partial(_fused_kd_kernel, cfg=cfg)

    out = pl.pallas_call(
        kernel,
        out_shape=jax.ShapeDtypeStruct((1, 1), jnp.float32),
        grid_spec=pltpu.PrefetchScalarGridSpec(
            num_scalar_prefetch=0,
            grid=(L,),
            in_specs=in_specs,
            out_specs=pl.BlockSpec((1, 1), lambda l: (0, 0),
                                   memory_space=pltpu.MemorySpace.SMEM),
        ),
        compiler_params=pltpu.CompilerParams(
            dimension_semantics=("arbitrary",)),     # accumulation axis
        cost_estimate=pl.CostEstimate(flops=flops,
                                      transcendentals=transcendentals,
                                      bytes_accessed=bytes_accessed),
    )(*args)
    return out[0, 0]


# ----------------------------------------------------------------------------
# KnowledgeDistillationLoss (parameter container + forward)
# ----------------------------------------------------------------------------
def _init_linear(key, in_dim, out_dim):
    """Deterministic init mimicking nn.Linear defaults (uniform +-1/sqrt(in))."""
    kw, kb = jax.random.split(key)
    bound = 1.0 / jnp.sqrt(jnp.float32(in_dim))
    w = jax.random.uniform(kw, (in_dim, out_dim), jnp.float32, -bound, bound)
    b = jax.random.uniform(kb, (out_dim,), jnp.float32, -bound, bound)
    return w, b


class KnowledgeDistillationLoss:
    def __init__(self, teacher_embd_dim, student_embd_dim,
                 teacher_hddn_dim, student_hddn_dim, layer_mapping, key):
        self.layer_mapping = list(layer_mapping)
        L = len(self.layer_mapping)
        keys = jax.random.split(key, 1 + L)

        # Embedding projection (bias hoisted to kernel-ready (1, Dt) layout).
        ew, eb = _init_linear(keys[0], student_embd_dim, teacher_embd_dim)
        self.embd_w = ew                                    # (Ds_e, Dt_e)
        self.embd_b = eb.reshape(1, teacher_embd_dim)       # (1, Dt_e)

        # Per-layer hidden projections, pre-stacked along the layer axis.
        ws, bs = [], []
        for i in range(L):
            w, b = _init_linear(keys[1 + i], student_hddn_dim, teacher_hddn_dim)
            ws.append(w)
            bs.append(b.reshape(1, teacher_hddn_dim))
        self.hddn_w = jnp.stack(ws)                         # (L, Ds_h, Dt_h)
        self.hddn_b = jnp.stack(bs)                         # (L, 1, Dt_h)

    def __call__(self, teacher_out, student_out, penalize_prediction=False):
        L = len(self.layer_mapping)
        # Stack mapped per-layer tensors so a single gridded kernel covers them.
        t_attn = jnp.stack([teacher_out['attentions'][te]
                            for te in self.layer_mapping])
        s_attn = jnp.stack([student_out['attentions'][i] for i in range(L)])
        t_hddn = jnp.stack([teacher_out['hidden_states'][te]
                            for te in self.layer_mapping])
        s_hddn = jnp.stack([student_out['hidden_states'][i] for i in range(L)])

        t_logits = teacher_out['logits'] if penalize_prediction else None
        s_logits = student_out['logits'] if penalize_prediction else None

        return fused_kd_loss(
            t_attn, s_attn, t_hddn, s_hddn, self.hddn_w, self.hddn_b,
            teacher_out['embeddings'], student_out['embeddings'],
            self.embd_w, self.embd_b,
            t_logits, s_logits, temperature=1.0)


# ----------------------------------------------------------------------------
# Pure-JAX reference (for sanity checking only)
# ----------------------------------------------------------------------------
def _reference(kd, teacher_out, student_out, penalize_prediction):
    def mse(t, s):
        return jnp.mean((s - t) ** 2)

    loss = mse(teacher_out['embeddings'],
               student_out['embeddings'] @ kd.embd_w + kd.embd_b[0])
    for st_i, te_i in enumerate(kd.layer_mapping):
        loss += mse(teacher_out['attentions'][te_i],
                    student_out['attentions'][st_i])
        loss += mse(teacher_out['hidden_states'][te_i],
                    student_out['hidden_states'][st_i] @ kd.hddn_w[st_i]
                    + kd.hddn_b[st_i, 0])
    if penalize_prediction:
        t, s = teacher_out['logits'], student_out['logits']
        p = jax.nn.softmax(t, axis=-1)
        logq = jax.nn.log_softmax(s, axis=-1)
        loss += jnp.mean(-jnp.sum(p * logq, axis=-1))
    return loss


# ----------------------------------------------------------------------------
# Demo
# ----------------------------------------------------------------------------
if __name__ == "__main__":
    key = jax.random.PRNGKey(0)

    # Problem sizes (small, consistent with the module's 2-D [rows, features] API)
    word_count = 16          # embedding rows
    teacher_embd_dim = 64
    student_embd_dim = 32
    batch = 8
    attn_channels = 64       # attention outputs have matching teacher/student dims
    teacher_hddn_dim = 64
    student_hddn_dim = 32
    vocab = 128              # logits width
    n_teacher_layers = 4
    layer_mapping = [0, 2]   # student layer i -> teacher layer layer_mapping[i]
    n_student_layers = len(layer_mapping)

    keys = jax.random.split(key, 16)
    k = iter(keys)

    teacher_out = {
        'embeddings': jax.random.normal(next(k), (word_count, teacher_embd_dim),
                                        jnp.float32),
        'attentions': [jax.random.normal(next(k), (batch, attn_channels),
                                         jnp.float32)
                       for _ in range(n_teacher_layers)],
        'hidden_states': [jax.random.normal(next(k), (batch, teacher_hddn_dim),
                                            jnp.float32)
                          for _ in range(n_teacher_layers)],
        'logits': jax.random.normal(next(k), (batch, vocab), jnp.float32),
    }
    student_out = {
        'embeddings': jax.random.normal(next(k), (word_count, student_embd_dim),
                                        jnp.float32),
        'attentions': [jax.random.normal(next(k), (batch, attn_channels),
                                         jnp.float32)
                       for _ in range(n_student_layers)],
        'hidden_states': [jax.random.normal(next(k), (batch, student_hddn_dim),
                                            jnp.float32)
                          for _ in range(n_student_layers)],
        'logits': jax.random.normal(next(k), (batch, vocab), jnp.float32),
    }

    kd = KnowledgeDistillationLoss(teacher_embd_dim, student_embd_dim,
                                   teacher_hddn_dim, student_hddn_dim,
                                   layer_mapping, key=jax.random.PRNGKey(42))

    loss = kd(teacher_out, student_out, penalize_prediction=True)
    loss = jax.block_until_ready(loss)

    ref = _reference(kd, teacher_out, student_out, penalize_prediction=True)
    assert jnp.allclose(loss, ref, rtol=1e-5, atol=1e-5), (loss, ref)

    # Also exercise the no-prediction path (second compiled variant).
    loss2 = jax.block_until_ready(kd(teacher_out, student_out,
                                     penalize_prediction=False))
    ref2 = _reference(kd, teacher_out, student_out, penalize_prediction=False)
    assert jnp.allclose(loss2, ref2, rtol=1e-5, atol=1e-5), (loss2, ref2)

    print("KERNEL_OK")
</pallas_src>

<mosaic_0001>
module attributes {stable_mosaic.version = 11 : i64} {
  func.func @_fused_kd_kernel(%arg0: i32, %arg1: memref<1x8x64xf32, #tpu.memory_space<vmem>>, %arg2: memref<1x8x64xf32, #tpu.memory_space<vmem>>, %arg3: memref<1x8x64xf32, #tpu.memory_space<vmem>>, %arg4: memref<1x8x32xf32, #tpu.memory_space<vmem>>, %arg5: memref<1x32x64xf32, #tpu.memory_space<vmem>>, %arg6: memref<1x1x64xf32, #tpu.memory_space<vmem>>, %arg7: memref<16x64xf32, #tpu.memory_space<vmem>>, %arg8: memref<16x32xf32, #tpu.memory_space<vmem>>, %arg9: memref<32x64xf32, #tpu.memory_space<vmem>>, %arg10: memref<1x64xf32, #tpu.memory_space<vmem>>, %arg11: memref<8x128xf32, #tpu.memory_space<vmem>>, %arg12: memref<8x128xf32, #tpu.memory_space<vmem>>, %arg13: memref<1x1xf32, #tpu.memory_space<smem>>) attributes {dimension_semantics = [#tpu.dimension_semantics<arbitrary>], iteration_bounds = array<i64: 2>, scalar_prefetch = 0 : i64, scratch_operands = 0 : i64, tpu.core_type = #tpu.core_type<tc>, window_params = [{transform_indices = @transform_0, window_bounds = array<i64: 1, 8, 64>}, {transform_indices = @transform_1, window_bounds = array<i64: 1, 8, 64>}, {transform_indices = @transform_2, window_bounds = array<i64: 1, 8, 64>}, {transform_indices = @transform_3, window_bounds = array<i64: 1, 8, 32>}, {transform_indices = @transform_4, window_bounds = array<i64: 1, 32, 64>}, {transform_indices = @transform_5, window_bounds = array<i64: 1, 1, 64>}, {pipeline_mode = #tpu.pipeline_mode<synchronous>, transform_indices = @transform_6, window_bounds = array<i64: 16, 64>}, {pipeline_mode = #tpu.pipeline_mode<synchronous>, transform_indices = @transform_7, window_bounds = array<i64: 16, 32>}, {pipeline_mode = #tpu.pipeline_mode<synchronous>, transform_indices = @transform_8, window_bounds = array<i64: 32, 64>}, {pipeline_mode = #tpu.pipeline_mode<synchronous>, transform_indices = @transform_9, window_bounds = array<i64: 1, 64>}, {pipeline_mode = #tpu.pipeline_mode<synchronous>, transform_indices = @transform_10, window_bounds = array<i64: 8, 128>}, {pipeline_mode = #tpu.pipeline_mode<synchronous>, transform_indices = @transform_11, window_bounds = array<i64: 8, 128>}, {transform_indices = @transform_12, window_bounds = array<i64: 1, 1>}]} {
    %c0_i32 = arith.constant 0 : i32
    %0 = arith.cmpi eq, %arg0, %c0_i32 : i32
    %1 = arith.extui %0 : i1 to i32
    %c0_i32_0 = arith.constant 0 : i32
    %2 = arith.cmpi ne, %1, %c0_i32_0 : i32
    scf.if %2 {
      %c0_26 = arith.constant 0 : index
      %c0_27 = arith.constant 0 : index
      %36 = vector.load %arg8[%c0_26, %c0_27] : memref<16x32xf32, #tpu.memory_space<vmem>>, vector<16x32xf32>
      %c0_28 = arith.constant 0 : index
      %c0_29 = arith.constant 0 : index
      %37 = vector.load %arg9[%c0_28, %c0_29] : memref<32x64xf32, #tpu.memory_space<vmem>>, vector<32x64xf32>
      %cst_30 = arith.constant dense<0.000000e+00> : vector<16x64xf32>
      %38 = tpu.matmul %36, %37, %cst_30 {dimension_numbers = #tpu.dot_dimension_numbers<[1], [0], [0], [1], [0, 0, 1, 1], [], []>} : vector<16x32xf32>, vector<32x64xf32>, vector<16x64xf32> -> vector<16x64xf32>
      %c0_31 = arith.constant 0 : index
      %c0_32 = arith.constant 0 : index
      %39 = vector.load %arg10[%c0_31, %c0_32] : memref<1x64xf32, #tpu.memory_space<vmem>>, vector<1x64xf32>
      %40 = vector.broadcast %39 : vector<1x64xf32> to vector<16x64xf32>
      %41 = arith.addf %38, %40 : vector<16x64xf32>
      %c0_33 = arith.constant 0 : index
      %c0_34 = arith.constant 0 : index
      %42 = vector.load %arg7[%c0_33, %c0_34] : memref<16x64xf32, #tpu.memory_space<vmem>>, vector<16x64xf32>
      %43 = arith.subf %41, %42 : vector<16x64xf32>
      %44 = arith.mulf %43, %43 : vector<16x64xf32>
      %45 = vector.shape_cast %44 : vector<16x64xf32> to vector<1x16x64xf32>
      %cst_35 = arith.constant dense<0.000000e+00> : vector<1xf32>
      %46 = vector.multi_reduction <add>, %45, %cst_35 [1, 2] : vector<1x16x64xf32> to vector<1xf32>
      %47 = vector.shape_cast %46 : vector<1xf32> to vector<1x1x1xf32>
      %48 = vector.extract %47[0, 0, 0] : f32 from vector<1x1x1xf32>
      %cst_36 = arith.constant 9.765625E-4 : f32
      %49 = arith.mulf %48, %cst_36 : f32
      %c0_37 = arith.constant 0 : index
      %c0_38 = arith.constant 0 : index
      %50 = vector.load %arg11[%c0_37, %c0_38] : memref<8x128xf32, #tpu.memory_space<vmem>>, vector<8x128xf32>
      %cst_39 = arith.constant 1.000000e+00 : f32
      %51 = vector.broadcast %cst_39 : f32 to vector<8x128xf32>
      %52 = arith.mulf %50, %51 : vector<8x128xf32>
      %c0_40 = arith.constant 0 : index
      %c0_41 = arith.constant 0 : index
      %53 = vector.load %arg12[%c0_40, %c0_41] : memref<8x128xf32, #tpu.memory_space<vmem>>, vector<8x128xf32>
      %cst_42 = arith.constant 1.000000e+00 : f32
      %54 = vector.broadcast %cst_42 : f32 to vector<8x128xf32>
      %55 = arith.mulf %53, %54 : vector<8x128xf32>
      %cst_43 = arith.constant dense<0xFF800000> : vector<8xf32>
      %56 = vector.multi_reduction <maximumf>, %52, %cst_43 [1] : vector<8x128xf32> to vector<8xf32>
      %57 = vector.shape_cast %56 : vector<8xf32> to vector<8x1xf32>
      %58 = vector.broadcast %57 : vector<8x1xf32> to vector<8x128xf32>
      %59 = arith.subf %52, %58 : vector<8x128xf32>
      %60 = math.exp %59 : vector<8x128xf32>
      %cst_44 = arith.constant dense<0.000000e+00> : vector<8xf32>
      %61 = vector.multi_reduction <add>, %60, %cst_44 [1] : vector<8x128xf32> to vector<8xf32>
      %62 = vector.shape_cast %61 : vector<8xf32> to vector<8x1xf32>
      %cst_45 = arith.constant dense<0xFF800000> : vector<8xf32>
      %63 = vector.multi_reduction <maximumf>, %55, %cst_45 [1] : vector<8x128xf32> to vector<8xf32>
      %64 = vector.shape_cast %63 : vector<8xf32> to vector<8x1xf32>
      %65 = vector.broadcast %64 : vector<8x1xf32> to vector<8x128xf32>
      %66 = arith.subf %55, %65 : vector<8x128xf32>
      %67 = math.exp %66 : vector<8x128xf32>
      %cst_46 = arith.constant dense<0.000000e+00> : vector<8xf32>
      %68 = vector.multi_reduction <add>, %67, %cst_46 [1] : vector<8x128xf32> to vector<8xf32>
      %69 = vector.shape_cast %68 : vector<8xf32> to vector<8x1xf32>
      %70 = math.log %69 : vector<8x1xf32>
      %71 = arith.mulf %60, %66 : vector<8x128xf32>
      %cst_47 = arith.constant dense<0.000000e+00> : vector<8xf32>
      %72 = vector.multi_reduction <add>, %71, %cst_47 [1] : vector<8x128xf32> to vector<8xf32>
      %73 = vector.shape_cast %72 : vector<8xf32> to vector<8x1xf32>
      %74 = arith.divf %73, %62 : vector<8x1xf32>
      %75 = arith.subf %70, %74 : vector<8x1xf32>
      %76 = vector.shape_cast %75 : vector<8x1xf32> to vector<1x8x1xf32>
      %cst_48 = arith.constant dense<0.000000e+00> : vector<1xf32>
      %77 = vector.multi_reduction <add>, %76, %cst_48 [1, 2] : vector<1x8x1xf32> to vector<1xf32>
      %78 = vector.shape_cast %77 : vector<1xf32> to vector<1x1x1xf32>
      %79 = vector.extract %78[0, 0, 0] : f32 from vector<1x1x1xf32>
      %cst_49 = arith.constant 1.250000e-01 : f32
      %80 = arith.mulf %79, %cst_49 : f32
      %81 = arith.addf %49, %80 : f32
      %c0_50 = arith.constant 0 : index
      %c0_51 = arith.constant 0 : index
      %82 = memref.load %arg13[%c0_50, %c0_51] : memref<1x1xf32, #tpu.memory_space<smem>>
      memref.store %81, %arg13[%c0_50, %c0_51] : memref<1x1xf32, #tpu.memory_space<smem>>
    } else {
    }
    %c0 = arith.constant 0 : index
    %c0_1 = arith.constant 0 : index
    %c0_2 = arith.constant 0 : index
    %3 = vector.load %arg2[%c0, %c0_1, %c0_2] : memref<1x8x64xf32, #tpu.memory_space<vmem>>, vector<1x8x64xf32>
    %4 = vector.shape_cast %3 : vector<1x8x64xf32> to vector<8x64xf32>
    %c0_3 = arith.constant 0 : index
    %c0_4 = arith.constant 0 : index
    %c0_5 = arith.constant 0 : index
    %5 = vector.load %arg1[%c0_3, %c0_4, %c0_5] : memref<1x8x64xf32, #tpu.memory_space<vmem>>, vector<1x8x64xf32>
    %6 = vector.shape_cast %5 : vector<1x8x64xf32> to vector<8x64xf32>
    %7 = arith.subf %4, %6 : vector<8x64xf32>
    %8 = arith.mulf %7, %7 : vector<8x64xf32>
    %9 = vector.shape_cast %8 : vector<8x64xf32> to vector<1x8x64xf32>
    %cst = arith.constant dense<0.000000e+00> : vector<1xf32>
    %10 = vector.multi_reduction <add>, %9, %cst [1, 2] : vector<1x8x64xf32> to vector<1xf32>
    %11 = vector.shape_cast %10 : vector<1xf32> to vector<1x1x1xf32>
    %12 = vector.extract %11[0, 0, 0] : f32 from vector<1x1x1xf32>
    %cst_6 = arith.constant 0.001953125 : f32
    %13 = arith.mulf %12, %cst_6 : f32
    %c0_7 = arith.constant 0 : index
    %c0_8 = arith.constant 0 : index
    %c0_9 = arith.constant 0 : index
    %14 = vector.load %arg4[%c0_7, %c0_8, %c0_9] : memref<1x8x32xf32, #tpu.memory_space<vmem>>, vector<1x8x32xf32>
    %15 = vector.shape_cast %14 : vector<1x8x32xf32> to vector<8x32xf32>
    %c0_10 = arith.constant 0 : index
    %c0_11 = arith.constant 0 : index
    %c0_12 = arith.constant 0 : index
    %16 = vector.load %arg5[%c0_10, %c0_11, %c0_12] : memref<1x32x64xf32, #tpu.memory_space<vmem>>, vector<1x32x64xf32>
    %17 = vector.shape_cast %16 : vector<1x32x64xf32> to vector<32x64xf32>
    %cst_13 = arith.constant dense<0.000000e+00> : vector<8x64xf32>
    %18 = tpu.matmul %15, %17, %cst_13 {dimension_numbers = #tpu.dot_dimension_numbers<[1], [0], [0], [1], [0, 0, 1, 1], [], []>} : vector<8x32xf32>, vector<32x64xf32>, vector<8x64xf32> -> vector<8x64xf32>
    %c0_14 = arith.constant 0 : index
    %c0_15 = arith.constant 0 : index
    %c0_16 = arith.constant 0 : index
    %19 = vector.load %arg6[%c0_14, %c0_15, %c0_16] : memref<1x1x64xf32, #tpu.memory_space<vmem>>, vector<1x1x64xf32>
    %20 = vector.shape_cast %19 : vector<1x1x64xf32> to vector<1x64xf32>
    %21 = vector.broadcast %20 : vector<1x64xf32> to vector<8x64xf32>
    %22 = arith.addf %18, %21 : vector<8x64xf32>
    %c0_17 = arith.constant 0 : index
    %c0_18 = arith.constant 0 : index
    %c0_19 = arith.constant 0 : index
    %23 = vector.load %arg3[%c0_17, %c0_18, %c0_19] : memref<1x8x64xf32, #tpu.memory_space<vmem>>, vector<1x8x64xf32>
    %24 = vector.shape_cast %23 : vector<1x8x64xf32> to vector<8x64xf32>
    %25 = arith.subf %22, %24 : vector<8x64xf32>
    %26 = arith.mulf %25, %25 : vector<8x64xf32>
    %27 = vector.shape_cast %26 : vector<8x64xf32> to vector<1x8x64xf32>
    %cst_20 = arith.constant dense<0.000000e+00> : vector<1xf32>
    %28 = vector.multi_reduction <add>, %27, %cst_20 [1, 2] : vector<1x8x64xf32> to vector<1xf32>
    %29 = vector.shape_cast %28 : vector<1xf32> to vector<1x1x1xf32>
    %30 = vector.extract %29[0, 0, 0] : f32 from vector<1x1x1xf32>
    %cst_21 = arith.constant 0.001953125 : f32
    %31 = arith.mulf %30, %cst_21 : f32
    %32 = arith.addf %13, %31 : f32
    %c0_22 = arith.constant 0 : index
    %c0_23 = arith.constant 0 : index
    %33 = memref.load %arg13[%c0_22, %c0_23] : memref<1x1xf32, #tpu.memory_space<smem>>
    %34 = arith.addf %33, %32 : f32
    %c0_24 = arith.constant 0 : index
    %c0_25 = arith.constant 0 : index
    %35 = memref.load %arg13[%c0_24, %c0_25] : memref<1x1xf32, #tpu.memory_space<smem>>
    memref.store %34, %arg13[%c0_24, %c0_25] : memref<1x1xf32, #tpu.memory_space<smem>>
    return
  }
  func.func @transform_0(%arg0: i32) -> (i32, i32, i32) {
    %c0_i32 = arith.constant 0 : i32
    %c0_i32_0 = arith.constant 0 : i32
    %c0_i32_1 = arith.constant 0 : i32
    return %arg0, %c0_i32, %c0_i32_0 : i32, i32, i32
  }
  func.func @transform_1(%arg0: i32) -> (i32, i32, i32) {
    %c0_i32 = arith.constant 0 : i32
    %c0_i32_0 = arith.constant 0 : i32
    %c0_i32_1 = arith.constant 0 : i32
    return %arg0, %c0_i32, %c0_i32_0 : i32, i32, i32
  }
  func.func @transform_2(%arg0: i32) -> (i32, i32, i32) {
    %c0_i32 = arith.constant 0 : i32
    %c0_i32_0 = arith.constant 0 : i32
    %c0_i32_1 = arith.constant 0 : i32
    return %arg0, %c0_i32, %c0_i32_0 : i32, i32, i32
  }
  func.func @transform_3(%arg0: i32) -> (i32, i32, i32) {
    %c0_i32 = arith.constant 0 : i32
    %c0_i32_0 = arith.constant 0 : i32
    %c0_i32_1 = arith.constant 0 : i32
    return %arg0, %c0_i32, %c0_i32_0 : i32, i32, i32
  }
  func.func @transform_4(%arg0: i32) -> (i32, i32, i32) {
    %c0_i32 = arith.constant 0 : i32
    %c0_i32_0 = arith.constant 0 : i32
    %c0_i32_1 = arith.constant 0 : i32
    return %arg0, %c0_i32, %c0_i32_0 : i32, i32, i32
  }
  func.func @transform_5(%arg0: i32) -> (i32, i32, i32) {
    %c0_i32 = arith.constant 0 : i32
    %c0_i32_0 = arith.constant 0 : i32
    %c0_i32_1 = arith.constant 0 : i32
    return %arg0, %c0_i32, %c0_i32_0 : i32, i32, i32
  }
  func.func @transform_6(%arg0: i32) -> (i32, i32) {
    %c0_i32 = arith.constant 0 : i32
    %c0_i32_0 = arith.constant 0 : i32
    %c0_i32_1 = arith.constant 0 : i32
    return %c0_i32, %c0_i32_0 : i32, i32
  }
  func.func @transform_7(%arg0: i32) -> (i32, i32) {
    %c0_i32 = arith.constant 0 : i32
    %c0_i32_0 = arith.constant 0 : i32
    %c0_i32_1 = arith.constant 0 : i32
    return %c0_i32, %c0_i32_0 : i32, i32
  }
  func.func @transform_8(%arg0: i32) -> (i32, i32) {
    %c0_i32 = arith.constant 0 : i32
    %c0_i32_0 = arith.constant 0 : i32
    %c0_i32_1 = arith.constant 0 : i32
    return %c0_i32, %c0_i32_0 : i32, i32
  }
  func.func @transform_9(%arg0: i32) -> (i32, i32) {
    %c0_i32 = arith.constant 0 : i32
    %c0_i32_0 = arith.constant 0 : i32
    %c0_i32_1 = arith.constant 0 : i32
    return %c0_i32, %c0_i32_0 : i32, i32
  }
  func.func @transform_10(%arg0: i32) -> (i32, i32) {
    %c0_i32 = arith.constant 0 : i32
    %c0_i32_0 = arith.constant 0 : i32
    %c0_i32_1 = arith.constant 0 : i32
    return %c0_i32, %c0_i32_0 : i32, i32
  }
  func.func @transform_11(%arg0: i32) -> (i32, i32) {
    %c0_i32 = arith.constant 0 : i32
    %c0_i32_0 = arith.constant 0 : i32
    %c0_i32_1 = arith.constant 0 : i32
    return %c0_i32, %c0_i32_0 : i32, i32
  }
  func.func @transform_12(%arg0: i32) -> (i32, i32) {
    %c0_i32 = arith.constant 0 : i32
    %c0_i32_0 = arith.constant 0 : i32
    %c0_i32_1 = arith.constant 0 : i32
    return %c0_i32, %c0_i32_0 : i32, i32
  }
}

</mosaic_0001>

<bundles_post_ra>
// kernel: tpu_custom_call.1
= control target key start
LH: loop header
LB: loop body
LE: loop exit
PB: predicated region body
PF: predicated region fallthrough
CT: control target
= control target key end

     0   :  { %s2060_s0 = inlined_call_operand.hbm [shape: f32[2,8,64], index: 0, kind: input, shape index: {}]   ;;  %s2061_s1 = inlined_call_operand.hbm [shape: f32[2,8,64], index: 1, kind: input, shape index: {}]   ;;  %s2062_s2 = inlined_call_operand.hbm [shape: f32[2,8,64], index: 2, kind: input, shape index: {}]   ;;  %s2063_s3 = inlined_call_operand.hbm [shape: f32[2,8,32], index: 3, kind: input, shape index: {}]   ;;  %s2064_s4 = inlined_call_operand.hbm [shape: f32[2,32,64], index: 4, kind: input, shape index: {}]   ;;  %s2065_s5 = inlined_call_operand.vmem [shape: f32[2,1,64], index: 5, kind: input, shape index: {}]   ;;  %s2066_s6 = inlined_call_operand.vmem [shape: f32[16,64], index: 6, kind: input, shape index: {}]   ;;  %s2067_s7 = inlined_call_operand.hbm [shape: f32[16,32], index: 7, kind: input, shape index: {}]   ;;  %s2068_s8 = inlined_call_operand.hbm [shape: f32[32,64], index: 8, kind: input, shape index: {}]   ;;  %s2069_s9 = inlined_call_operand.hbm [shape: f32[1,64], index: 9, kind: input, shape index: {}]   ;;  %s2070_s10 = inlined_call_operand.vmem [shape: f32[8,128], index: 10, kind: input, shape index: {}]   ;;  %s2071_s11 = inlined_call_operand.vmem [shape: f32[8,128], index: 11, kind: input, shape index: {}]   ;;  %s2072_s12 = inlined_call_operand.hbm [shape: f32[1,1], index: 12, kind: output, shape index: {}]  }
   0x1   :  { %2096 = sst [smem:[#allocation27_spill]] %s2061_s1 }
   0x2   :  { %2097 = sst [smem:[#allocation28_spill]] %s2063_s3 }
   0x3   :  { %2098 = sst [smem:[#allocation29_spill]] %s2065_s5 }
   0x4   :  { %2099 = sst [smem:[#allocation30_spill]] %s2066_s6 }
   0x5   :  { %2100 = sst [smem:[#allocation31_spill]] %s2067_s7 }
   0x6   :  { %2101 = sst [smem:[#allocation32_spill]] %s2070_s10 }
   0x7   :  { %2102 = sst [smem:[#allocation33_spill]] %s2071_s11 }
   0x8   :  { %2103 = sst [smem:[#allocation34_spill]] %s2072_s12 }
   0x9   :  { %17 = vsyncpa [#allocation3], 0 }
   0xa   :  { %19 = vsyncpa [#allocation3 + $0x1], 0 }
   0xb   :  { %20 = vsyncpa [#allocation6], 0 }
   0xc   :  { %22 = vsyncpa [#allocation6 + $0x1], 0 }
   0xd   :  { %23 = vsyncpa [#allocation9], 0 }
   0xe   :  { %25 = vsyncpa [#allocation9 + $0x1], 0 }
   0xf   :  { %26 = vsyncpa [#allocation12], 0 }
  0x10   :  { %27 = vsyncpa [#allocation15], 0 }
  0x11   :  { %28 = vsyncpa [#allocation4], 0  ;;  %s1660_s21 = smov 0   ;;  %s1662_s22 = smov 0  }
  0x12   :  { %s1664_s23 = smov 0   ;;  %s1666_s24 = smov 0  }
  0x13 LB: > { %2104 = sst [smem:[#allocation23_spill]] %s1575_s23  ;;  %s1679_s25 = sadd.s32 4294967295, %s1579_s24   ;;  %s1579_s24 = sphi %s1666_s24, %s2141_s24   ;;  %s1575_s23 = sphi %s1664_s23, %s2143_s23   ;;  %s1571_s22 = sphi %s1662_s22, %s2145_s22   ;;  %s1567_s21 = sphi %s1660_s21, %s2144_s21  }
  0x14   : > { %2105 = sst [smem:[#allocation24_spill]] %s1679_s25  ;;  %p54_p0 = scmp.ne.s32.totalorder %s1571_s22, %s1567_s21 }
  0x15   : > { %p2074_p1 = scmp.eq.s32.totalorder %s1679_s25, 0  ;;  %p1078_p2 = scmp.ge.s32.totalorder %s1579_s24, 1 }
  0x16   : > { %p342_p3 = scmp.lt.s32.totalorder %s1579_s24, 3  ;;  %s1581_s28 = smov [#allocation11]  }
  0x17   : > { %p1688_p5 = por %p2074_p1, %p54_p0  ;;  %s357_s29 = sshll.u32 %s1581_s28, 4  ;;  %s358_s29 = int_to_ptr.vmem [resolvable:$true] %s357_s29 }
  0x18   : > { %p1692_p6 = pnand %p1078_p2, %p342_p3  ;;  %s1705_s13 = sadd.s32 1, %s1579_s24  }
  0x19   : > { %s2106_s26 = scalar_select %p1688_p5, 1, 0 }
  0x1a   : > { %s2107_s27 = scalar_select %p1692_p6, 1, 0 }
  0x1b   : > { %p1195_p7 = pneg %p1692_p6  ;;  %2109 = sst [smem:[#allocation25_spill]] %s1705_s13 }
  0x1c   : > { %s41_s14 = sadd.s32 1, %s1575_s23  ;;  %s38_s15 = ssub.s32 %s1579_s24, %s1705_s13 }
  0x1d   : > { %p1700_p8 = pnand %p1195_p7, %p2074_p1  ;;  %s2110_s7 = sld [smem:[#allocation31_spill]] }
  0x1f   : > { %s2108_s30 = scalar_select %p1700_p8, 1, 0 }
  0x20   : > { %p1718_p10 = pneg %p1700_p8 }
  0x22   : > { %s2111_s21 = scalar_select %p1718_p10, 1, 0 }
  0x23   : > { %s1279_s18 = scalar_lea.hbm %s2110_s7, 256 }
  0x24   : > { %p1280_p9 = scmp.ne.s32.totalorder %s2110_s7, %s1279_s18  ;;  %p1286_p13 = scmp.lt.u32.totalorder %s1279_s18, %s2110_s7 }
  0x26   : > { %p1282_p11 = pnand %p1718_p10, %p1280_p9 }
  0x28   : > { %p1283_p12 = pneg %p1282_p11 }
  0x2a   : > { %p1288_p0 = pnand %p1286_p13, %p1283_p12 }
  0x2c   : > { %1291 = shalt.err (!%p1288_p0)
}
  0x2d   : > { %s1292_s16 = scalar_lea.vmem %s358_s29, 256  ;;  %p1300_p4 = scmp.lt.s32.totalorder %s358_s29, %s358_s29 }
  0x2e   : > { %p1293_p2 = scmp.ne.s32.totalorder %s358_s29, %s1292_s16  ;;  %p1301_p1 = scmp.lt.s32.totalorder %s1292_s16, %s1292_s16 }
  0x30   : > { %p1295_p3 = pnand %p1293_p2, %p1718_p10  ;;  %p1302_p5 = por %p1301_p1, %p1300_p4 }
  0x32   : > { %p1296_p7 = pneg %p1295_p3 }
  0x34   : > { %p1303_p6 = pnand %p1302_p5, %p1296_p7 }
  0x36   : > { %1306 = shalt.err (!%p1303_p6)
}
  0x37   : > { %s2079_s17 = smov 128   ;;  %s2081_s12 = smov 8  }
  0x38   : > { %1198 = dma.hbm_to_vmem [thread:$0]  (!%p1700_p8), %s2110_s7, 256, %s358_s29, [#allocation12], %s2079_s17, %s2079_s17, %s2081_s12  }
  0x39   : > { %p39_p1 = scmp.eq.s32.totalorder %s38_s15, 0  ;;  %p48_p4 = scmp.ne.s32.totalorder %s1575_s23, %s1571_s22 }
  0x3a   : > { %p49_p5 = scmp.eq.s32.totalorder %s1579_s24, 0  ;;  %p1224_p6 = scmp.lt.s32.totalorder %s1579_s24, 2 }
  0x3b   : > { %s1742_s20 = scalar_select %p39_p1, %s1575_s23, %s41_s14  }
  0x3c   : > { %p50_p9 = por %p49_p5, %p48_p4  ;;  %s1745_s28 = sand.u32 1, %s1575_s23  }
  0x3d   : > { %2112 = sst [smem:[#allocation26_spill]] %s1742_s20  ;;  %s1748_s16 = sshll.u32 %s1745_s28, 3 }
  0x3e   : > { %s1751_s13 = sshll.u32 %s1579_s24, 7  ;;  %p1753_p11 = pnand %p1224_p6, %p50_p9 }
  0x3f   : > { %s2085_s29 = sand.u32 1, %s1579_s24   ;;  %s2114_s1 = sld [smem:[#allocation27_spill]] }
  0x40   : > { %s2113_s18 = scalar_select %p1753_p11, 1, 0 }
  0x41   : > { %s423_s17 = scalar_lea.vmem [#allocation5], %s1748_s16  ;;  %s1769_s7 = scalar_lea.sflag [#allocation6], %s2085_s29 }
  0x42   : > { %s430_s12 = sshll.u32 %s423_s17, 4  ;;  %p1775_p13 = pneg %p1753_p11  ;;  %s1765_s12 = int_to_ptr.vmem [resolvable:$true] %s430_s12 }
  0x44   : > { %s2115_s23 = scalar_select %p1775_p13, 1, 0 }
  0x45   : > { %s1762_s14 = scalar_lea.hbm %s2114_s1, %s1751_s13  ;;  %s1312_s17 = scalar_lea.hbm %s2114_s1, 256 }
  0x46   : > { %s1307_s20 = scalar_lea.hbm %s1762_s14, 128  ;;  %p1313_p3 = scmp.lt.u32.totalorder %s1762_s14, %s2114_s1 }
  0x47   : > { %p1308_p12 = scmp.ne.s32.totalorder %s1762_s14, %s1307_s20  ;;  %p1314_p7 = scmp.lt.u32.totalorder %s1312_s17, %s1307_s20 }
  0x48   : > { %p1316_p4 = scmp.lt.u32.totalorder %s1307_s20, %s1762_s14 }
  0x49   : > { %p1310_p0 = pnand %p1775_p13, %p1308_p12  ;;  %p1315_p1 = por %p1314_p7, %p1313_p3 }
  0x4b   : > { %p1311_p2 = pneg %p1310_p0  ;;  %p1317_p5 = por %p1316_p4, %p1315_p1 }
  0x4d   : > { %p1318_p6 = pnand %p1317_p5, %p1311_p2 }
  0x4f   : > { %1321 = shalt.err (!%p1318_p6)
}
  0x50   : > { %s1322_s29 = scalar_lea.vmem %s1765_s12, 128  ;;  %s1584_s15 = smov [#allocation5]  }
  0x51   : > { %p1323_p9 = scmp.ne.s32.totalorder %s1765_s12, %s1322_s29  ;;  %s1327_s19 = sshll.u32 %s1584_s15, 4  ;;  %s1328_s19 = int_to_ptr.vmem [resolvable:$false] %s1327_s19 }
  0x52   : > { %s1329_s6 = scalar_lea.vmem %s1328_s19, 256  ;;  %p1330_p8 = scmp.lt.s32.totalorder %s1765_s12, %s1328_s19 }
  0x53   : > { %p1325_p12 = pnand %p1323_p9, %p1775_p13  ;;  %p1331_p10 = scmp.lt.s32.totalorder %s1329_s6, %s1322_s29 }
  0x55   : > { %p1326_p0 = pneg %p1325_p12  ;;  %p1332_p3 = por %p1331_p10, %p1330_p8 }
  0x57   : > { %p1333_p7 = pnand %p1332_p3, %p1326_p0 }
  0x59   : > { %1336 = shalt.err (!%p1333_p7)
}
  0x5a   : > { %1211 = dma.hbm_to_vmem [thread:$0]  (!%p1753_p11), %s1762_s14, 128, %s1765_s12, %s1769_s7  }
  0x5b   : > { %s2116_s3 = sld [smem:[#allocation28_spill]]  ;;  %s459_s29 = scalar_lea.vmem [#allocation8], %s1748_s16 }
  0x5c   : > { %s466_s15 = sshll.u32 %s459_s29, 4  ;;  %s2117_s19 = sand.u32 1, %s1579_s24   ;;  %s467_s15 = int_to_ptr.vmem [resolvable:$true] %s466_s15 }
  0x5d   : > { %s1808_s6 = scalar_lea.sflag [#allocation9], %s2117_s19 }
  0x61   : > { %s1803_s17 = scalar_lea.hbm %s2116_s3, %s1751_s13  ;;  %s1342_s11 = scalar_lea.hbm %s2116_s3, 256 }
  0x62   : > { %s1337_s1 = scalar_lea.hbm %s1803_s17, 128  ;;  %p1343_p1 = scmp.lt.u32.totalorder %s1803_s17, %s2116_s3 }
  0x63   : > { %p1338_p8 = scmp.ne.s32.totalorder %s1803_s17, %s1337_s1  ;;  %p1344_p4 = scmp.lt.u32.totalorder %s1342_s11, %s1337_s1 }
  0x64   : > { %p1346_p6 = scmp.lt.u32.totalorder %s1337_s1, %s1803_s17 }
  0x65   : > { %p1340_p10 = pnand %p1338_p8, %p1775_p13  ;;  %p1345_p5 = por %p1344_p4, %p1343_p1 }
  0x67   : > { %p1341_p2 = pneg %p1340_p10  ;;  %p1347_p9 = por %p1346_p6, %p1345_p5 }
  0x69   : > { %p1348_p12 = pnand %p1347_p9, %p1341_p2 }
  0x6b   : > { %1351 = shalt.err (!%p1348_p12)
}
  0x6c   : > { %s1352_s29 = scalar_lea.vmem %s467_s15, 128  ;;  %s1585_s19 = smov [#allocation8]  }
  0x6d   : > { %p1353_p0 = scmp.ne.s32.totalorder %s467_s15, %s1352_s29  ;;  %s1357_s5 = sshll.u32 %s1585_s19, 4  ;;  %s1358_s5 = int_to_ptr.vmem [resolvable:$false] %s1357_s5 }
  0x6e   : > { %s1359_s12 = scalar_lea.vmem %s1358_s5, 256  ;;  %p1360_p8 = scmp.lt.s32.totalorder %s467_s15, %s1358_s5 }
  0x6f   : > { %p1355_p3 = pnand %p1353_p0, %p1775_p13  ;;  %p1361_p10 = scmp.lt.s32.totalorder %s1359_s12, %s1352_s29 }
  0x71   : > { %p1356_p7 = pneg %p1355_p3  ;;  %p1362_p11 = por %p1361_p10, %p1360_p8 }
  0x73   : > { %p1363_p1 = pnand %p1362_p11, %p1356_p7 }
  0x75   : > { %1366 = shalt.err (!%p1363_p1)
}
  0x76   : > { %p2118_p4 = scmp.ne.s32.totalorder %s2113_s18, 0  ;;  %s1586_s1 = smov [#allocation13]  }
  0x77   : > { %s370_s10 = sshll.u32 %s1586_s1, 4  ;;  %s1587_s14 = smov [#allocation14]   ;;  %s371_s10 = int_to_ptr.vmem [resolvable:$true] %s370_s10 }
  0x78   : > { %1217 = dma.hbm_to_vmem [thread:$0]  (!%p2118_p4), %s1803_s17, 128, %s467_s15, %s1808_s6  }
  0x79   : > { %s384_s11 = sshll.u32 %s1587_s14, 4  ;;  %s1367_s3 = scalar_lea.hbm %s2068_s8, 512  ;;  %s385_s11 = int_to_ptr.vmem [resolvable:$true] %s384_s11 }
  0x7a   : > { %p1368_p11 = scmp.ne.s32.totalorder %s2068_s8, %s1367_s3  ;;  %p2119_p2 = scmp.ne.s32.totalorder %s2111_s21, 0 }
  0x7b   : > { %p1374_p9 = scmp.lt.u32.totalorder %s1367_s3, %s2068_s8 }
  0x7c   : > { %p1370_p5 = pnand %p1368_p11, %p2119_p2 }
  0x7e   : > { %p1371_p6 = pneg %p1370_p5 }
  0x80   : > { %p1376_p12 = pnand %p1374_p9, %p1371_p6 }
  0x82   : > { %1379 = shalt.err (!%p1376_p12)
}
  0x83   : > { %s1380_s17 = scalar_lea.vmem %s371_s10, 512  ;;  %p1388_p8 = scmp.lt.s32.totalorder %s371_s10, %s371_s10 }
  0x84   : > { %p1381_p0 = scmp.ne.s32.totalorder %s371_s10, %s1380_s17  ;;  %p1389_p10 = scmp.lt.s32.totalorder %s1380_s17, %s1380_s17 }
  0x86   : > { %p1383_p3 = pnand %p1381_p0, %p2119_p2  ;;  %p1390_p1 = por %p1389_p10, %p1388_p8 }
  0x88   : > { %p1384_p7 = pneg %p1383_p3 }
  0x8a   : > { %p1391_p4 = pnand %p1390_p1, %p1384_p7 }
  0x8c   : > { %1394 = shalt.err (!%p1391_p4)
}
  0x8d   : > { %p2120_p11 = scmp.ne.s32.totalorder %s2108_s30, 0  ;;  %s2121_s15 = smov 8  }
  0x8e   : > { %s2122_s1 = smov 128   ;;  %s1395_s19 = scalar_lea.hbm %s2069_s9, 16 }
  0x8f   : > { %1201 = dma.hbm_to_vmem [thread:$0]  (!%p2120_p11), %s2068_s8, 512, %s371_s10, [#allocation12], %s2122_s1, %s2122_s1, %s2121_s15  }
  0x90   : > { %p1396_p5 = scmp.ne.s32.totalorder %s2069_s9, %s1395_s19  ;;  %p1402_p9 = scmp.lt.u32.totalorder %s1395_s19, %s2069_s9 }
  0x92   : > { %p1398_p4 = pnand %p1396_p5, %p2119_p2 }
  0x94   : > { %p1399_p6 = pneg %p1398_p4 }
  0x96   : > { %p1404_p12 = pnand %p1402_p9, %p1399_p6 }
  0x98   : > { %1407 = shalt.err (!%p1404_p12)
}
  0x99   : > { %s1408_s25 = scalar_lea.vmem %s385_s11, 16  ;;  %s1415_s10 = scalar_lea.vmem %s385_s11, 32 }
  0x9a   : > { %p1409_p0 = scmp.ne.s32.totalorder %s385_s11, %s1408_s25  ;;  %p1416_p8 = scmp.lt.s32.totalorder %s385_s11, %s385_s11 }
  0x9b   : > { %p1417_p10 = scmp.lt.s32.totalorder %s1415_s10, %s1408_s25 }
  0x9c   : > { %p1411_p3 = pnand %p1409_p0, %p2119_p2 }
  0x9d   : > { %p1418_p1 = por %p1417_p10, %p1416_p8 }
  0x9e   : > { %p1412_p7 = pneg %p1411_p3 }
  0xa0   : > { %p1419_p13 = pnand %p1418_p1, %p1412_p7 }
  0xa2   : > { %1422 = shalt.err (!%p1419_p13)
}
  0xa3   : > { %1204 = dma.hbm_to_vmem [thread:$0]  (!%p2120_p11), %s2069_s9, 16, %s385_s11, [#allocation15]  }
  0xa4   : > { %s1871_s19 = scalar_lea.hbm %s2060_s0, %s1751_s13  ;;  %s405_s5 = scalar_lea.vmem [#allocation2], %s1748_s16 }
  0xa5   : > { %s412_s30 = sshll.u32 %s405_s5, 4  ;;  %s1880_s17 = scalar_lea.hbm %s2062_s2, %s1751_s13  ;;  %s1874_s30 = int_to_ptr.vmem [resolvable:$true] %s412_s30 }
  0xa6   : > { %s402_s25 = scalar_lea.sflag [#allocation3], %s1745_s28  ;;  %s1423_s11 = scalar_lea.hbm %s1871_s19, 128 }
  0xa7   : > { %p1424_p13 = scmp.ne.s32.totalorder %s1871_s19, %s1423_s11  ;;  %p2123_p2 = scmp.ne.s32.totalorder %s2115_s23, 0 }
  0xa8   : > { %s1428_s14 = scalar_lea.hbm %s2060_s0, 256  ;;  %p1429_p4 = scmp.lt.u32.totalorder %s1871_s19, %s2060_s0 }
  0xa9   : > { %p1426_p11 = pnand %p1424_p13, %p2123_p2  ;;  %p1430_p6 = scmp.lt.u32.totalorder %s1428_s14, %s1423_s11 }
  0xaa   : > { %p1432_p12 = scmp.lt.u32.totalorder %s1423_s11, %s1871_s19 }
  0xab   : > { %p1427_p5 = pneg %p1426_p11  ;;  %p1431_p9 = por %p1430_p6, %p1429_p4 }
  0xad   : > { %p1433_p0 = por %p1432_p12, %p1431_p9 }
  0xaf   : > { %p1434_p3 = pnand %p1433_p0, %p1427_p5 }
  0xb1   : > { %1437 = shalt.err (!%p1434_p3)
}
  0xb2   : > { %s1438_s13 = scalar_lea.vmem %s1874_s30, 128  ;;  %s1588_s5 = smov [#allocation2]  }
  0xb3   : > { %p1439_p7 = scmp.ne.s32.totalorder %s1874_s30, %s1438_s13  ;;  %s1443_s29 = sshll.u32 %s1588_s5, 4  ;;  %s1444_s29 = int_to_ptr.vmem [resolvable:$false] %s1443_s29 }
  0xb4   : > { %s1445_s12 = scalar_lea.vmem %s1444_s29, 256  ;;  %p1446_p1 = scmp.lt.s32.totalorder %s1874_s30, %s1444_s29 }
  0xb5   : > { %p1441_p8 = pnand %p1439_p7, %p2123_p2  ;;  %p1447_p13 = scmp.lt.s32.totalorder %s1445_s12, %s1438_s13 }
  0xb7   : > { %p1442_p10 = pneg %p1441_p8  ;;  %p1448_p11 = por %p1447_p13, %p1446_p1 }
  0xb9   : > { %p1449_p4 = pnand %p1448_p11, %p1442_p10 }
  0xbb   : > { %1452 = shalt.err (!%p1449_p4)
}
  0xbc   : > { %p2124_p5 = scmp.ne.s32.totalorder %s2113_s18, 0  ;;  %s441_s11 = scalar_lea.vmem [#allocation7], %s1748_s16 }
  0xbd   : > { %s448_s10 = sshll.u32 %s441_s11, 4  ;;  %s1091_s3 = sshll.u32 %s1745_s28, 5  ;;  %s449_s10 = int_to_ptr.vmem [resolvable:$true] %s448_s10 }
  0xbe   : > { %1208 = dma.hbm_to_vmem [thread:$0]  (!%p2124_p5), %s1871_s19, 128, %s1874_s30, %s402_s25  }
  0xbf   : > { %s1453_s14 = scalar_lea.hbm %s1880_s17, 128  ;;  %s1458_s13 = scalar_lea.hbm %s2062_s2, 256 }
  0xc0   : > { %p1454_p6 = scmp.ne.s32.totalorder %s1880_s17, %s1453_s14  ;;  %p1459_p0 = scmp.lt.u32.totalorder %s1880_s17, %s2062_s2 }
  0xc1   : > { %p1460_p3 = scmp.lt.u32.totalorder %s1458_s13, %s1453_s14  ;;  %p1462_p8 = scmp.lt.u32.totalorder %s1453_s14, %s1880_s17 }
  0xc2   : > { %p1456_p9 = pnand %p1454_p6, %p2123_p2 }
  0xc3   : > { %p1461_p7 = por %p1460_p3, %p1459_p0 }
  0xc4   : > { %p1457_p12 = pneg %p1456_p9 }
  0xc5   : > { %p1463_p10 = por %p1462_p8, %p1461_p7 }
  0xc7   : > { %p1464_p1 = pnand %p1463_p10, %p1457_p12 }
  0xc9   : > { %1467 = shalt.err (!%p1464_p1)
}
  0xca   : > { %s1468_s16 = scalar_lea.vmem %s449_s10, 128  ;;  %s1589_s19 = smov [#allocation7]  }
  0xcb   : > { %p1469_p13 = scmp.ne.s32.totalorder %s449_s10, %s1468_s16  ;;  %s1473_s30 = sshll.u32 %s1589_s19, 4  ;;  %s1474_s30 = int_to_ptr.vmem [resolvable:$false] %s1473_s30 }
  0xcc   : > { %s1475_s25 = scalar_lea.vmem %s1474_s30, 256  ;;  %p1476_p6 = scmp.lt.s32.totalorder %s449_s10, %s1474_s30 }
  0xcd   : > { %p1471_p11 = pnand %p1469_p13, %p2123_p2  ;;  %p1477_p9 = scmp.lt.s32.totalorder %s1475_s25, %s1468_s16 }
  0xcf   : > { %p1472_p4 = pneg %p1471_p11  ;;  %p1478_p5 = por %p1477_p9, %p1476_p6 }
  0xd1   : > { %p1479_p0 = pnand %p1478_p5, %p1472_p4 }
  0xd3   : > { %1482 = shalt.err (!%p1479_p0)
}
  0xd4   : > { %p2125_p3 = scmp.ne.s32.totalorder %s2113_s18, 0  ;;  %s1113_s12 = sshll.u32 %s1579_s24, 9 }
  0xd5   : > { %s477_s11 = scalar_lea.vmem [#allocation10], %s1091_s3  ;;  %s1930_s13 = scalar_lea.hbm %s2064_s4, %s1113_s12 }
  0xd6   : > { %1214 = dma.hbm_to_vmem [thread:$0]  (!%p2125_p3), %s1880_s17, 128, %s449_s10, %s1769_s7  }
  0xd7   : > { %s484_s14 = sshll.u32 %s477_s11, 4  ;;  %s1483_s5 = scalar_lea.hbm %s1930_s13, 512  ;;  %s1932_s14 = int_to_ptr.vmem [resolvable:$true] %s484_s14 }
  0xd8   : > { %p1484_p5 = scmp.ne.s32.totalorder %s1930_s13, %s1483_s5  ;;  %s1488_s28 = scalar_lea.hbm %s2064_s4, 1024 }
  0xd9   : > { %p1489_p8 = scmp.lt.u32.totalorder %s1930_s13, %s2064_s4  ;;  %p1490_p10 = scmp.lt.u32.totalorder %s1488_s28, %s1483_s5 }
  0xda   : > { %p1486_p12 = pnand %p1484_p5, %p2123_p2  ;;  %p1492_p13 = scmp.lt.u32.totalorder %s1483_s5, %s1930_s13 }
  0xdb   : > { %p1491_p1 = por %p1490_p10, %p1489_p8 }
  0xdc   : > { %p1487_p7 = pneg %p1486_p12 }
  0xdd   : > { %p1493_p11 = por %p1492_p13, %p1491_p1 }
  0xdf   : > { %p1494_p4 = pnand %p1493_p11, %p1487_p7 }
  0xe1   : > { %1497 = shalt.err (!%p1494_p4)
}
  0xe2   : > { %s1498_s3 = scalar_lea.vmem %s1932_s14, 512  ;;  %s1590_s29 = smov [#allocation10]  }
  0xe3   : > { %p1499_p6 = scmp.ne.s32.totalorder %s1932_s14, %s1498_s3  ;;  %s1503_s16 = sshll.u32 %s1590_s29, 4  ;;  %s1504_s16 = int_to_ptr.vmem [resolvable:$false] %s1503_s16 }
  0xe4   : > { %s1505_s19 = scalar_lea.vmem %s1504_s16, 1024  ;;  %p1506_p5 = scmp.lt.s32.totalorder %s1932_s14, %s1504_s16 }
  0xe5   : > { %p1501_p9 = pnand %p1499_p6, %p2123_p2  ;;  %p1507_p12 = scmp.lt.s32.totalorder %s1505_s19, %s1498_s3 }
  0xe7   : > { %p1502_p0 = pneg %p1501_p9  ;;  %p1508_p8 = por %p1507_p12, %p1506_p5 }
  0xe9   : > { %p1509_p10 = pnand %p1508_p8, %p1502_p0 }
  0xeb   : > { %1512 = shalt.err (!%p1509_p10)
}
  0xec   : > { %1220 = dma.hbm_to_vmem [thread:$0]  (!%p2125_p3), %s1930_s13, 512, %s1932_s14, %s1808_s6, %s2122_s1, %s2122_s1, %s2121_s15  }
  0xed   : > { %p2126_p2 = scmp.ne.s32.totalorder %s2107_s27, 0 }
  0xee   : > { %s504_s23 = sand.u32 (!%p2126_p2), 1, %s1571_s22   ;;  %p2127_p7 = scmp.ne.s32.totalorder (!%p2126_p2), %s2106_s26, 0 }
  0xef   : > { %502 = sbr.rel (%p2126_p2) target bundleno = 1250 (0x4e2), region = 68  ;;  %s1962_s30 = sshll.u32 (!%p2126_p2), %s504_s23, 3 }
  0xf0   : > { %s505_s25 = scalar_lea.sflag (!%p2126_p2), [#allocation3], %s504_s23  ;;  %s508_s12 = scalar_lea.vmem (!%p2126_p2), [#allocation2], %s1962_s30 }
  0xf6   : > { %1542 = dma.done.wait (%p2127_p7), %s505_s25, 128  }
  0xf7   : > { %1544 = vsyncadd (%p2127_p7), %s505_s25, 4294967168  ;;  %s2128_s18 = sld [smem:[#allocation24_spill]]  ;;  %s517_s27 = scalar_lea.vmem [#allocation5], %s1962_s30 }
  0xfd   : > { %s513_s6 = sand.u32 1, %s2128_s18  }
  0xfe   : > { %s514_s15 = scalar_lea.sflag [#allocation6], %s513_s6 }
  0xff   : > { %1546 = dma.done.wait (%p2127_p7), %s514_s15, 256  }
 0x100   : > { %1548 = vsyncadd (%p2127_p7), %s514_s15, 4294967040  ;;  %s526_s1 = scalar_lea.vmem [#allocation7], %s1962_s30  ;;  %s532_s11 = scalar_lea.sflag [#allocation9], %s513_s6 }
 0x101   : > { %s535_s14 = scalar_lea.vmem [#allocation8], %s1962_s30 }
 0x102   : > { %1550 = dma.done.wait (%p2127_p7), %s532_s11, 640  }
 0x103   : > { %1552 = vsyncadd (%p2127_p7), %s532_s11, 4294966656  ;;  %s1099_s21 = sshll.u32 %s504_s23, 5  ;;  %p2129_p3 = scmp.eq.s32.totalorder %s2128_s18, 0 }
 0x104   : > { %s1981_s20 = scalar_lea.vmem [#allocation10], %s1099_s21 }
 0x105   : > { %1554 = dma.done.wait (%p2129_p3), [#allocation12], 768   ;;  %p2130_p1 = pmov %p2129_p3 }
 0x107   : > { %1556 = vsyncadd (%p2130_p1), [#allocation12], 4294966528  ;;  %p2131_p13 = pmov %p2130_p1 }
 0x108   : > { %p2132_p11 = pmov %p2130_p1 }
 0x109   : > { %1558 = dma.done.wait (%p2131_p13), [#allocation15], 16  }
 0x10a   : > { %1560 = vsyncadd (%p2132_p11), [#allocation15], 4294967280  ;;  %p615_p4 = scmp.lt.s32.totalorder %s2128_s18, 1  ;;  %s2133_s7 = sld [smem:[#allocation29_spill]] }
 0x10b   : > { %p2134_p6 = scmp.ne.s32.totalorder %s2128_s18, 0 }
 0x10c   : > { %s1993_s26 = scalar_select %p615_p4, %s2128_s18, 1 }
 0x10d   : > { %621 = sbr.rel (%p2134_p6) target bundleno = 804 (0x324), region = 104  ;;  %s2135_s10 = sld [smem:[#allocation32_spill]] (!%p2134_p6)  ;;  %v624_v1 = vld [vmem:[#allocation13] sm:$0xff] (!%p2134_p6)  ;;  %vm635_vm0 = vcmask (!%p2134_p6), 261120   ;;  %v625_v2 = vld [vmem:[#allocation13 + $0x8] sm:$0xff] (!%p2134_p6)  ;;  %v626_v3 = vld [vmem:[#allocation13 + $0x10] sm:$0xff] (!%p2134_p6) }
 0x10e   : > { %v627_v4 = vld [vmem:[#allocation13 + $0x18] sm:$0xff] (!%p2134_p6)  ;;  %s2136_s16 = sld [smem:[#allocation33_spill]] (!%p2134_p6)  ;;  %v1147_v6 = vpack.c.bf16 (!%p2134_p6), %v625_v2, %v624_v1  ;;  %v622_v8 = vld [vmem:[#allocation11] sm:$0xff] (!%p2134_p6)  ;;  %v1104_v19 = vld [vmem:[#allocation14] ss:$0 sm:$0xff] (!%p2134_p6)  ;;  %s2137_s25 = sld [smem:[#allocation30_spill]] (!%p2134_p6) }
 0x10f   : > { %v1151_v7 = vpack.c.bf16 (!%p2134_p6), %v627_v4, %v626_v3  ;;  %1133 = vmatprep.mubr.msk.f32.mxu0 (!%p2134_p6), %vm635_vm0, %v622_v8  ;;  %v623_v9 = vld [vmem:[#allocation11 + $0x8] sm:$0xff] (!%p2134_p6)  ;;  %vm723_vm1 = vcmask (!%p2134_p6), 523264   ;;  %vm761_vm2 = vcmask (!%p2134_p6), 7168  }
 0x110   : > { %s617_s24 = scalar_lea.vmem %s2133_s7, %s1993_s26  ;;  %1148 = vmatprep.subr.bf16.mxu0 (!%p2134_p6), %v1147_v6 }
 0x111   : > { %1150 = vmatpush3.bf16.msra.mxu0 (!%p2134_p6), %v1147_v6 }
 0x112   : > { %1152 = vmatprep.subr.bf16.mxu0 (!%p2134_p6), %v1151_v7 }
 0x113   : > { %v737_v0 = vld [vmem:[%s2135_s10] sm:$0xff] (!%p2134_p6) }
 0x114   : > { %739 = vmax.xlane.f32.xlu0 %v737_v0  ;;  %v738_v5 = vld [vmem:[%s2136_s16] sm:$0xff]  ;;  %v718_v21 = vld [vmem:[%s2137_s25 + $0x8] sm:$0xff] }
 0x115   : > { %1154 = vmatpush3.bf16.msra.mxu0 %v1151_v7  ;;  %v717_v24 = vld [vmem:[%s2137_s25] sm:$0xff] }
 0x118   : > { %746 = vmax.xlane.f32.xlu0 %v738_v5  ;;  %1134 = vmatmul.mubr.msk.f32.vlgmr.msra.gmra.mrb[0].mxu0 %vm635_vm0, %v623_v9 }
 0x1a1   : > { %v740_v10 = vpop.xlane.xlu0 %739 }
 0x1a2   : > { %v741_v11 = vsub.f32 %v737_v0, %v740_v10 }
 0x1a4   : > { %v742_v12 = vmul.f32 1.442695, %v741_v11 }
 0x1a5   : > { %v747_v13 = vpop.xlane.xlu0 %746 }
 0x1a6   : > { %1271 = vpow2.f32 %v742_v12  ;;  %v748_v14 = vsub.f32 %v738_v5, %v747_v13 }
 0x1a8   : > { %v749_v15 = vmul.f32 1.442695, %v748_v14 }
 0x1aa   : > { %1273 = vpow2.f32 %v749_v15 }
 0x1b0   : > { %v1272_v16 = vpop.eup %1271 }
 0x1b1   : > { %744 = vadd.xlane.f32.xlu1 %v1272_v16  ;;  %v755_v17 = vmul.f32 %v1272_v16, %v748_v14 }
 0x1b3   : > { %756 = vadd.xlane.f32.xlu0 %v755_v17 }
 0x1b4   : > { %v1274_v18 = vpop.eup %1273 }
 0x1b5   : > { %751 = vadd.xlane.f32.xlu1 %v1274_v18 }
 0x1eb   : > { %v1135_v20 = vpop.f32.mrb[0].mxu0 }
 0x1ec   : > { %v714_v22 = vadd.f32 %v1135_v20, %v1104_v19  ;;  %v708_v23 = vpop.f32.mrb[1].mxu0 }
 0x1ed   : > { %v709_v25 = vadd.f32 %v1104_v19, %v708_v23 }
 0x1ee   : > { %v720_v26 = vsub.f32 %v714_v22, %v718_v21 }
 0x1ef   : > { %v719_v27 = vsub.f32 %v709_v25, %v717_v24 }
 0x1f0   : > { %v722_v28 = vmul.f32 %v720_v26, %v720_v26 }
 0x1f1   : > { %v721_v29 = vmul.f32 %v719_v27, %v719_v27 }
 0x1f2   : > { %v725_v30 = vsel %vm723_vm1, %v722_v28, 0.0 }
 0x1f3   : > { %v724_v31 = vsel %vm723_vm1, %v721_v29, 0.0 }
 0x1f4   : > { %v726_v32 = vadd.f32 %v725_v30, %v724_v31 }
 0x1f6   : > { %727 = vadd.xlane.f32.xlu1 %v726_v32 }
 0x23e   : > { %v745_v33 = vpop.xlane.xlu1 %744 }
 0x23f   : > { %1275 = vrcp.f32 %v745_v33 }
 0x240   : > { %v757_v37 = vpop.xlane.xlu0 %756 }
 0x242   : > { %v752_v34 = vpop.xlane.xlu1 %751 }
 0x243   : > { %1277 = vlog2.f32 %v752_v34 }
 0x249   : > { %v1276_v35 = vpop.eup %1275 }
 0x24a   : > { %v759_v38 = vmul.f32 %v1276_v35, %v757_v37 }
 0x24d   : > { %v1278_v36 = vpop.eup %1277 }
 0x24e   : > { %v754_v39 = vmul.f32 0.6931472, %v1278_v36 }
 0x250   : > { %v760_v40 = vsub.f32 %v754_v39, %v759_v38 }
 0x252   : > { %v762_v41 = vsel %vm761_vm2, %v760_v40, 0.0 }
 0x253   : > { %763 = vadd.xlane.f32.xlu0 %v762_v41 }
 0x283   : > { %v728_v42 = vpop.xlane.xlu1 %727 }
 0x284   : > { %v729_v43 = vrot.slane %v728_v42, 4 }
 0x286   : > { %v730_v44 = vadd.f32 %v729_v43, %v728_v42 }
 0x288   : > { %v731_v45 = vrot.slane %v730_v44, 2 }
 0x28a   : > { %v732_v46 = vadd.f32 %v731_v45, %v730_v44 }
 0x28c   : > { %v733_v47 = vrot.slane %v732_v46, 1 }
 0x28e   : > { %v734_v48 = vadd.f32 %v733_v47, %v732_v46 }
 0x290   : > { %1161 = vpush %v734_v48 }
 0x2c1   : > { %s1162_s15 = spop %1161 }
 0x2c2   : > { %s736_s11 = smul.f32 0.0009765625, %s1162_s15 }
 0x2e0   : > { %v764_v49 = vpop.xlane.xlu0 %763 }
 0x2e1   : > { %v765_v50 = vrot.slane %v764_v49, 4 }
 0x2e3   : > { %v766_v51 = vadd.f32 %v765_v50, %v764_v49 }
 0x2e5   : > { %v767_v52 = vrot.slane %v766_v51, 2 }
 0x2e7   : > { %v768_v53 = vadd.f32 %v767_v52, %v766_v51 }
 0x2e9   : > { %v769_v54 = vrot.slane %v768_v53, 1 }
 0x2eb   : > { %v770_v55 = vadd.f32 %v769_v54, %v768_v53 }
 0x2ed   : > { %1163 = vpush %v770_v55 }
 0x31e   : > { %s1164_s21 = spop %1163 }
 0x31f   : > { %s772_s13 = smul.f32 0.125, %s1164_s21 }
 0x321   : > { %s773_s5 = sadd.f32 %s772_s13, %s736_s11 }
 0x323   : > { %775 = sst [smem:[#allocation16]] %s773_s5 }
 0x324 PF: > { %v793_v56 = vld [vmem:[%s1981_s20] sm:$0xff]  ;;  %v794_v57 = vld [vmem:[%s1981_s20 + $0x8] sm:$0xff]  ;;  %v795_v58 = vld [vmem:[%s1981_s20 + $0x10] sm:$0xff]  ;;  %v1591_v59 = vmov 0.0|0.0   ;;  %vm1592_vm3 = vmmov 0   ;;  %v1593_v62 = vmov 0.0  }
 0x325   : > { %1155 = vmatprep.subr.bf16.mxu0 %v1591_v59  ;;  %v1156_v60 = vpack.c.bf16 %v794_v57, %v793_v56  ;;  %v796_v61 = vld [vmem:[%s1981_s20 + $0x18] sm:$0xff]  ;;  %1144 = vmatprep.mubr.msk.f32.mxu0 %vm1592_vm3, %v1593_v62  ;;  %v777_v0 = vld [vmem:[%s508_s12] sm:$0xff]  ;;  %vm780_vm4 = vcmask 523264   ;;  %vm804_vm5 = vcmask 261120   ;;  %s2139_s12 = sld [smem:[#allocation24_spill]]  ;;  %s2140_s29 = sld [smem:[#allocation34_spill]] }
 0x326   : > { %v776_v63 = vld [vmem:[%s517_s27] sm:$0xff]  ;;  %v1159_v1 = vpack.c.bf16 %v796_v61, %v795_v58  ;;  %v1107_v6 = vld [vmem:[%s617_s24] ss:$0 sm:$0xff] }
 0x327   : > { %1157 = vmatpush3.bf16.msra.mxu0 %v1156_v60  ;;  %v778_v2 = vsub.f32 %v776_v63, %v777_v0  ;;  %v792_v4 = vld [vmem:[%s535_s14] sm:$0xff]  ;;  %v878_v8 = vld [vmem:[%s526_s1] sm:$0xff]  ;;  %s893_s1 = sld [smem:[#allocation16]] }
 0x328   : > { %1158 = vmatprep.subr.bf16.mxu0 %v1591_v59 }
 0x329   : > { %v779_v3 = vmul.f32 %v778_v2, %v778_v2 }
 0x32b   : > { %1160 = vmatpush3.bf16.msra.mxu0 %v1159_v1  ;;  %v781_v5 = vsel %vm780_vm4, %v779_v3, 0.0  ;;  %p1228_p9 = scmp.eq.s32.totalorder %s2139_s12, 1  ;;  %s1513_s16 = scalar_lea.hbm %s2140_s29, 16 }
 0x32c   : > { %782 = vadd.xlane.f32.xlu0 %v781_v5  ;;  %p1514_p0 = scmp.ne.s32.totalorder %s2140_s29, %s1513_s16  ;;  %p1519_p8 = scmp.lt.u32.totalorder %s1513_s16, %s2140_s29 }
 0x32e   : > { %1145 = vmatmul.mubr.msk.f32.vlgmr.msra.gmra.mrb[0].mxu0 %vm804_vm5, %v792_v4  ;;  %p1515_p5 = pnand %p1514_p0, %p1228_p9 }
 0x330   : > { %p1516_p12 = pneg %p1515_p5 }
 0x332   : > { %p1521_p10 = pnand %p1519_p8, %p1516_p12 }
 0x3b9   : > { %v783_v12 = vpop.xlane.xlu0 %782 }
 0x3ba   : > { %v784_v14 = vrot.slane %v783_v12, 4 }
 0x3bc   : > { %v785_v16 = vadd.f32 %v784_v14, %v783_v12 }
 0x3be   : > { %v786_v17 = vrot.slane %v785_v16, 2 }
 0x3c0   : > { %v787_v18 = vadd.f32 %v786_v17, %v785_v16 }
 0x3c2   : > { %v788_v19 = vrot.slane %v787_v18, 1 }
 0x3c4   : > { %v789_v20 = vadd.f32 %v788_v19, %v787_v18 }
 0x3c6   : > { %1165 = vpush %v789_v20 }
 0x3f7   : > { %s1166_s30 = spop %1165 }
 0x3f8   : > { %s791_s14 = smul.f32 0.001953125, %s1166_s30 }
 0x401   : > { %v874_v7 = vpop.f32.mrb[0].mxu0 }
 0x402   : > { %v875_v9 = vadd.f32 %v1107_v6, %v874_v7  ;;  %v1146_v10 = vpop.f32.mrb[1].mxu0 }
 0x404   : > { %v879_v11 = vsub.f32 %v875_v9, %v878_v8 }
 0x406   : > { %v880_v13 = vmul.f32 %v879_v11, %v879_v11 }
 0x408   : > { %v881_v15 = vsel %vm780_vm4, %v880_v13, 0.0 }
 0x409   : > { %882 = vadd.xlane.f32.xlu0 %v881_v15 }
 0x496   : > { %v883_v21 = vpop.xlane.xlu0 %882 }
 0x497   : > { %v884_v22 = vrot.slane %v883_v21, 4 }
 0x499   : > { %v885_v23 = vadd.f32 %v884_v22, %v883_v21 }
 0x49b   : > { %v886_v24 = vrot.slane %v885_v23, 2 }
 0x49d   : > { %v887_v25 = vadd.f32 %v886_v24, %v885_v23 }
 0x49f   : > { %v888_v26 = vrot.slane %v887_v25, 1 }
 0x4a1   : > { %v889_v27 = vadd.f32 %v888_v26, %v887_v25 }
 0x4a3   : > { %1167 = vpush %v889_v27 }
 0x4d4   : > { %s1168_s26 = spop %1167 }
 0x4d5   : > { %s891_s24 = smul.f32 0.001953125, %s1168_s26 }
 0x4d7   : > { %s892_s28 = sadd.f32 %s891_s24, %s791_s14 }
 0x4d9   : > { %s894_s17 = sadd.f32 %s893_s1, %s892_s28 }
 0x4db   : > { %896 = sst [smem:[#allocation16]] %s894_s17 }
 0x4dc   : > { %1524 = shalt.err (!%p1521_p10)
}
 0x4dd   : > { %s1594_s15 = smov [#allocation16]  }
 0x4de   : > { %1192 = dma.smem_to_hbm (%p1228_p9), %s1594_s15, 16, %s2140_s29, [#allocation4]  }
 0x4df   : > { %1562 = dma.done.wait (%p1228_p9), [#allocation4], 16  }
 0x4e0   : > { %1564 = vsyncadd (%p1228_p9), [#allocation4], 4294967280 }
 0x4e1   : > { %910 = sfence }
 0x4e2 PF: > { %s2141_s24 = sld [smem:[#allocation25_spill]]  ;;  %s2142_s13 = sld [smem:[#allocation23_spill]] }
 0x4e3   : > { %s2143_s23 = sld [smem:[#allocation26_spill]]  ;;  %s2144_s21 = smov %s1571_s22 }
 0x4e8   : > { %p31_p2 = scmp.ge.s32.totalorder %s2141_s24, 4   ;;  %s2145_s22 = smov %s2142_s13 }
 0x4ea   :  { %33 = sbr.rel (!%p31_p2) target bundleno = 19 (0x13), region = 174 }
 0x4f1   :  { %916 = vsyncpa [#allocation3], 1 }
 0x4f2   :  { %918 = vsyncpa [#allocation3 + $0x1], 1 }
 0x4f3   :  { %919 = vsyncpa [#allocation6], 1 }
 0x4f4   :  { %921 = vsyncpa [#allocation6 + $0x1], 1 }
 0x4f5   :  { %922 = vsyncpa [#allocation9], 1 }
 0x4f6   :  { %924 = vsyncpa [#allocation9 + $0x1], 1 }
 0x4f7   :  { %925 = vsyncpa [#allocation12], 1 }
 0x4f8   :  { %926 = vsyncpa [#allocation15], 1 }
 0x4f9   :  { %927 = vsyncpa [#allocation4], 1 }
 0x4fa   :  { %929 = vsyncpa [#allocation4 + $0x1], 1 }

</bundles_post_ra>
